<compile_context>
chip_gen: v5e
topology: v5e:2x2
jax: 0.10.0
libtpu: 0.0.40
codegen_flags: <defaults>
</compile_context>

<pallas_src>
import jax
import jax.numpy as jnp
from jax.experimental import pallas as pl
from jax.experimental.pallas import tpu as pltpu

# ----------------------------- configuration --------------------------------
BERT_DIM = 32      # args.bert_dim
HIDDEN_DIM = 32    # args.hidden_dim
MLP_LAYERS = 2     # args.mlp_layers
NUM_CLASS = 7      # num_class
BATCH = 2          # B
SEQ_LEN = 8        # L
MEM_LEN = 4        # args.mem_len (only used for the pass-through mems)

K_PAD = 128        # CLS feature dim padded to a full lane group (lane-dense vld)
H_PAD = 128        # hidden dim padded to the SMALLEST multiple of 128
N_PAD = 128        # output classes padded to a full lane group (unmasked vst)
TM_MAX = 1024      # max batch-tile rows per grid step (VMEM is not a constraint)

# TODO(synk): XLNetModel / XLNetModel_dialog backbone (pretrained transformer,
# relative-position attention, memory caching) is not re-implemented; its
# output `text_feature` is a kernel input and `mems` are passed through.


def _round_up(x, m):
    return ((x + m - 1) // m) * m


# ------------------------------ Pallas kernel --------------------------------
def erc_head_kernel(x_ref, wp_ref, wcat_ref, bcat_ref, out_ref):
    """Fused head: pool_fc (Linear+ReLU) -> dropout(eval=identity)
                   -> out_mlp (MLP_LAYERS x Linear+ReLU, then Linear).

    x_ref    : (TM, K_PAD)                bf16  CLS activations (one batch tile)
    wp_ref   : (K_PAD, H_PAD)             bf16  pool_fc weight (zero-padded)
    wcat_ref : (H_PAD, MLP*H_PAD + N_PAD) bf16  [w1 | w2 | wo] concatenated
    bcat_ref : (1, (MLP+1)*H_PAD + N_PAD) f32   [bp | b1 | b2 | bo]
    out_ref  : (TM, N_PAD)                f32   lane-dense padded logits
    """
    # pool_fc: Linear(bert_dim, hidden) + ReLU   (bf16 x bf16 -> f32 acc)
    h = jnp.dot(x_ref[...], wp_ref[...], preferred_element_type=jnp.float32)
    h = jnp.maximum(h + bcat_ref[:, 0:H_PAD], 0.0)

    # dropout: identity in eval mode (no-op)

    # out_mlp hidden layers (statically unrolled); static, 128-aligned slices
    for l in range(MLP_LAYERS):
        w = wcat_ref[:, l * H_PAD:(l + 1) * H_PAD]
        b = bcat_ref[:, (l + 1) * H_PAD:(l + 2) * H_PAD]
        h = jnp.dot(h.astype(jnp.bfloat16), w,
                    preferred_element_type=jnp.float32) + b
        h = jnp.maximum(h, 0.0)

    # out_mlp final: Linear(hidden, num_class) (padded to N_PAD lanes)
    wo = wcat_ref[:, MLP_LAYERS * H_PAD:MLP_LAYERS * H_PAD + N_PAD]
    bo = bcat_ref[:, (MLP_LAYERS + 1) * H_PAD:(MLP_LAYERS + 1) * H_PAD + N_PAD]
    out = jnp.dot(h.astype(jnp.bfloat16), wo,
                  preferred_element_type=jnp.float32) + bo
    out_ref[...] = out.astype(out_ref.dtype)


def erc_head_pallas(cls_tok, pp, num_batch_blocks=1, tm_max=TM_MAX):
    """cls_tok: (B, BERT_DIM) f32; pp: prepared (padded/concatenated/bf16) params.

    num_batch_blocks: 1 for v5e/v6e (single TC); 2 on v7x so both TensorCores
    get one balanced batch tile via dimension_semantics=("parallel",).
    """
    B, K = cls_tok.shape
    k_pad = pp["wp"].shape[0]

    # As few, fat grid steps as possible; TM rounded to 16 for bf16 packing.
    TM = min(tm_max, _round_up(pl.cdiv(B, num_batch_blocks), 16))
    B_pad = _round_up(B, TM)

    # Batch + feature pad and bf16 cast (halves HBM->VMEM bytes); zero-padded
    # rows/cols are exact (matching wp rows are zero) and fuse with the
    # upstream CLS slice under jit.
    x = jnp.pad(cls_tok.astype(jnp.bfloat16), ((0, B_pad - B), (0, k_pad - K)))

    grid = (B_pad // TM,)
    out_padded = pl.pallas_call(
        erc_head_kernel,
        out_shape=jax.ShapeDtypeStruct((B_pad, N_PAD), jnp.float32),
        grid_spec=pltpu.PrefetchScalarGridSpec(
            num_scalar_prefetch=0,
            grid=grid,
            in_specs=[
                pl.BlockSpec((TM, k_pad), lambda i: (i, 0)),          # activations
                pl.BlockSpec(pp["wp"].shape, lambda i: (0, 0)),       # resident
                pl.BlockSpec(pp["w_cat"].shape, lambda i: (0, 0)),    # resident
                pl.BlockSpec(pp["b_cat"].shape, lambda i: (0, 0)),    # resident
            ],
            out_specs=pl.BlockSpec((TM, N_PAD), lambda i: (i, 0)),
        ),
        compiler_params=pltpu.CompilerParams(
            dimension_semantics=("parallel",)),   # v7x: batch tiles over both TCs
    )(x, pp["wp"], pp["w_cat"], pp["b_cat"])

    # Slice back to logical shape; fuses into the consumer under jit.
    return out_padded[:B, :NUM_CLASS]


# ------------------------- parameter preparation ------------------------------
def prepare_params(p):
    """One-time (load-time) repack: zero-pad to lane-dense dims, concatenate the
    per-layer weights/biases (3 tensors instead of 9) and store the GEMM
    operands in bfloat16 in HBM.  Zero padding is numerically exact (padded
    hidden columns stay 0 after ReLU); biases stay f32 (added post-accum).
    """
    wp = jnp.zeros((K_PAD, H_PAD), jnp.float32)
    wp = wp.at[:BERT_DIM, :HIDDEN_DIM].set(p["wp"])

    w_cat = jnp.zeros((H_PAD, MLP_LAYERS * H_PAD + N_PAD), jnp.float32)
    for l in range(MLP_LAYERS):
        w_cat = w_cat.at[:HIDDEN_DIM, l * H_PAD:l * H_PAD + HIDDEN_DIM].set(
            p[f"w{l + 1}"])
    w_cat = w_cat.at[:HIDDEN_DIM,
                     MLP_LAYERS * H_PAD:MLP_LAYERS * H_PAD + NUM_CLASS].set(p["wo"])

    b_cat = jnp.zeros((1, (MLP_LAYERS + 1) * H_PAD + N_PAD), jnp.float32)
    b_cat = b_cat.at[0, :HIDDEN_DIM].set(p["bp"])
    for l in range(MLP_LAYERS):
        b_cat = b_cat.at[0, (l + 1) * H_PAD:(l + 1) * H_PAD + HIDDEN_DIM].set(
            p[f"b{l + 1}"])
    b_cat = b_cat.at[0, (MLP_LAYERS + 1) * H_PAD:
                        (MLP_LAYERS + 1) * H_PAD + NUM_CLASS].set(p["bo"])

    return {"wp": wp.astype(jnp.bfloat16),
            "w_cat": w_cat.astype(jnp.bfloat16),
            "b_cat": b_cat}


# ------------------------------ module wrapper --------------------------------
def erc_xlnet_forward(text_feature, mems, content_mask, prepared_params,
                      speaker_mask=None, window_mask=None, use_cls=True):
    """Mirrors ERC_xlnet.forward for the head computation.

    text_feature : (B, L, BERT_DIM)  -- stands in for the XLNet output.
    Returns (outputs, new_mems, speaker_mask, window_mask).
    """
    if use_cls:
        cls_tok = text_feature[:, 0, :]            # fuses with pad under jit
        outputs = erc_head_pallas(cls_tok, prepared_params)
    else:
        # TODO(synk): non-CLS path (pool_fc over full sequence + masked max over
        # L) is not exercised here; default module config is use_cls=True.
        raise NotImplementedError
    new_mems = mems  # backbone pass-through (see TODO above)
    return outputs, new_mems, speaker_mask, window_mask


# pure-JAX f32 reference of the head (unpadded params, for correctness check)
def erc_head_ref(cls_tok, p):
    h = jnp.maximum(cls_tok @ p["wp"] + p["bp"], 0.0)
    for l in range(MLP_LAYERS):
        h = jnp.maximum(h @ p[f"w{l + 1}"] + p[f"b{l + 1}"], 0.0)
    return h @ p["wo"] + p["bo"]


def init_params(key):
    ks = jax.random.split(key, 2 * (MLP_LAYERS + 2))
    def lin_w(kw, fan_in, fan_out):
        bound = 1.0 / jnp.sqrt(fan_in)
        return jax.random.uniform(kw, (fan_in, fan_out), jnp.float32, -bound, bound)
    def lin_b(kb, fan_out):
        return jax.random.uniform(kb, (fan_out,), jnp.float32, -0.05, 0.05)
    p = {
        "wp": lin_w(ks[0], BERT_DIM, HIDDEN_DIM), "bp": lin_b(ks[1], HIDDEN_DIM),
        "wo": lin_w(ks[2], HIDDEN_DIM, NUM_CLASS), "bo": lin_b(ks[3], NUM_CLASS),
    }
    for l in range(MLP_LAYERS):
        p[f"w{l + 1}"] = lin_w(ks[4 + 2 * l], HIDDEN_DIM, HIDDEN_DIM)
        p[f"b{l + 1}"] = lin_b(ks[5 + 2 * l], HIDDEN_DIM)
    return p


if __name__ == "__main__":
    key = jax.random.PRNGKey(0)
    k_feat, k_mem, k_par = jax.random.split(key, 3)

    # synthetic "XLNet output" and memories
    text_feature = jax.random.normal(k_feat, (BATCH, SEQ_LEN, BERT_DIM), jnp.float32)
    mems = tuple(jax.random.normal(jax.random.fold_in(k_mem, i),
                                   (MEM_LEN, BATCH, BERT_DIM), jnp.float32)
                 for i in range(2))
    content_mask = jnp.ones((BATCH, SEQ_LEN), jnp.float32)

    params = init_params(k_par)                 # per-layer (PyTorch-like) params
    prepared = prepare_params(params)           # one-time padded/bf16 repack

    forward = jax.jit(erc_xlnet_forward, static_argnames=("use_cls",))
    outputs, new_mems, speaker_mask, window_mask = forward(
        text_feature, mems, content_mask, prepared, use_cls=True)
    outputs = jax.block_until_ready(outputs)

    # verify against pure-JAX f32 reference (bf16 operands => loosened tol)
    ref = erc_head_ref(text_feature[:, 0, :], params)
    assert outputs.shape == (BATCH, NUM_CLASS)
    assert jnp.allclose(outputs, ref, atol=5e-2, rtol=5e-2), (
        f"max abs err = {jnp.max(jnp.abs(outputs - ref))}")

    print("KERNEL_OK")
</pallas_src>

<mosaic_0001>
module attributes {stable_mosaic.version = 11 : i64} {
  func.func @erc_head_kernel(%arg0: i32, %arg1: memref<16x128xbf16, #tpu.memory_space<vmem>>, %arg2: memref<128x128xbf16, #tpu.memory_space<vmem>>, %arg3: memref<128x384xbf16, #tpu.memory_space<vmem>>, %arg4: memref<1x512xf32, #tpu.memory_space<vmem>>, %arg5: memref<16x128xf32, #tpu.memory_space<vmem>>) attributes {dimension_semantics = [#tpu.dimension_semantics<parallel>], iteration_bounds = array<i64: 1>, scalar_prefetch = 0 : i64, scratch_operands = 0 : i64, tpu.core_type = #tpu.core_type<tc>, window_params = [{transform_indices = @transform_0, window_bounds = array<i64: 16, 128>}, {pipeline_mode = #tpu.pipeline_mode<synchronous>, transform_indices = @transform_1, window_bounds = array<i64: 128, 128>}, {pipeline_mode = #tpu.pipeline_mode<synchronous>, transform_indices = @transform_2, window_bounds = array<i64: 128, 384>}, {pipeline_mode = #tpu.pipeline_mode<synchronous>, transform_indices = @transform_3, window_bounds = array<i64: 1, 512>}, {transform_indices = @transform_4, window_bounds = array<i64: 16, 128>}]} {
    %c0 = arith.constant 0 : index
    %c0_0 = arith.constant 0 : index
    %0 = vector.load %arg1[%c0, %c0_0] : memref<16x128xbf16, #tpu.memory_space<vmem>>, vector<16x128xbf16>
    %c0_1 = arith.constant 0 : index
    %c0_2 = arith.constant 0 : index
    %1 = vector.load %arg2[%c0_1, %c0_2] : memref<128x128xbf16, #tpu.memory_space<vmem>>, vector<128x128xbf16>
    %cst = arith.constant dense<0.000000e+00> : vector<16x128xf32>
    %2 = tpu.matmul %0, %1, %cst {dimension_numbers = #tpu.dot_dimension_numbers<[1], [0], [0], [1], [0, 0, 1, 1], [], []>} : vector<16x128xbf16>, vector<128x128xbf16>, vector<16x128xf32> -> vector<16x128xf32>
    %c0_3 = arith.constant 0 : index
    %c0_4 = arith.constant 0 : index
    %3 = vector.load %arg4[%c0_3, %c0_4] : memref<1x512xf32, #tpu.memory_space<vmem>>, vector<1x128xf32>
    %4 = vector.broadcast %3 : vector<1x128xf32> to vector<16x128xf32>
    %5 = arith.addf %2, %4 : vector<16x128xf32>
    %cst_5 = arith.constant 0.000000e+00 : f32
    %6 = vector.broadcast %cst_5 : f32 to vector<16x128xf32>
    %7 = arith.maximumf %5, %6 : vector<16x128xf32>
    %c0_6 = arith.constant 0 : index
    %c0_7 = arith.constant 0 : index
    %8 = vector.load %arg3[%c0_6, %c0_7] : memref<128x384xbf16, #tpu.memory_space<vmem>>, vector<128x128xbf16>
    %c0_8 = arith.constant 0 : index
    %c128 = arith.constant 128 : index
    %9 = vector.load %arg4[%c0_8, %c128] : memref<1x512xf32, #tpu.memory_space<vmem>>, vector<1x128xf32>
    %10 = arith.truncf %7 : vector<16x128xf32> to vector<16x128xbf16>
    %cst_9 = arith.constant dense<0.000000e+00> : vector<16x128xf32>
    %11 = tpu.matmul %10, %8, %cst_9 {dimension_numbers = #tpu.dot_dimension_numbers<[1], [0], [0], [1], [0, 0, 1, 1], [], []>} : vector<16x128xbf16>, vector<128x128xbf16>, vector<16x128xf32> -> vector<16x128xf32>
    %12 = vector.broadcast %9 : vector<1x128xf32> to vector<16x128xf32>
    %13 = arith.addf %11, %12 : vector<16x128xf32>
    %cst_10 = arith.constant 0.000000e+00 : f32
    %14 = vector.broadcast %cst_10 : f32 to vector<16x128xf32>
    %15 = arith.maximumf %13, %14 : vector<16x128xf32>
    %c0_11 = arith.constant 0 : index
    %c128_12 = arith.constant 128 : index
    %16 = vector.load %arg3[%c0_11, %c128_12] : memref<128x384xbf16, #tpu.memory_space<vmem>>, vector<128x128xbf16>
    %c0_13 = arith.constant 0 : index
    %c256 = arith.constant 256 : index
    %17 = vector.load %arg4[%c0_13, %c256] : memref<1x512xf32, #tpu.memory_space<vmem>>, vector<1x128xf32>
    %18 = arith.truncf %15 : vector<16x128xf32> to vector<16x128xbf16>
    %cst_14 = arith.constant dense<0.000000e+00> : vector<16x128xf32>
    %19 = tpu.matmul %18, %16, %cst_14 {dimension_numbers = #tpu.dot_dimension_numbers<[1], [0], [0], [1], [0, 0, 1, 1], [], []>} : vector<16x128xbf16>, vector<128x128xbf16>, vector<16x128xf32> -> vector<16x128xf32>
    %20 = vector.broadcast %17 : vector<1x128xf32> to vector<16x128xf32>
    %21 = arith.addf %19, %20 : vector<16x128xf32>
    %cst_15 = arith.constant 0.000000e+00 : f32
    %22 = vector.broadcast %cst_15 : f32 to vector<16x128xf32>
    %23 = arith.maximumf %21, %22 : vector<16x128xf32>
    %c0_16 = arith.constant 0 : index
    %c256_17 = arith.constant 256 : index
    %24 = vector.load %arg3[%c0_16, %c256_17] : memref<128x384xbf16, #tpu.memory_space<vmem>>, vector<128x128xbf16>
    %c0_18 = arith.constant 0 : index
    %c384 = arith.constant 384 : index
    %25 = vector.load %arg4[%c0_18, %c384] : memref<1x512xf32, #tpu.memory_space<vmem>>, vector<1x128xf32>
    %26 = arith.truncf %23 : vector<16x128xf32> to vector<16x128xbf16>
    %cst_19 = arith.constant dense<0.000000e+00> : vector<16x128xf32>
    %27 = tpu.matmul %26, %24, %cst_19 {dimension_numbers = #tpu.dot_dimension_numbers<[1], [0], [0], [1], [0, 0, 1, 1], [], []>} : vector<16x128xbf16>, vector<128x128xbf16>, vector<16x128xf32> -> vector<16x128xf32>
    %28 = vector.broadcast %25 : vector<1x128xf32> to vector<16x128xf32>
    %29 = arith.addf %27, %28 : vector<16x128xf32>
    %c0_20 = arith.constant 0 : index
    %c0_21 = arith.constant 0 : index
    %30 = vector.load %arg5[%c0_20, %c0_21] : memref<16x128xf32, #tpu.memory_space<vmem>>, vector<16x128xf32>
    tpu.vector_store %arg5[%c0_20, %c0_21], %29 {strides = array<i32>} : memref<16x128xf32, #tpu.memory_space<vmem>>, vector<16x128xf32>,
    return
  }
  func.func @transform_0(%arg0: i32) -> (i32, i32) {
    %c0_i32 = arith.constant 0 : i32
    %c0_i32_0 = arith.constant 0 : i32
    return %arg0, %c0_i32 : i32, i32
  }
  func.func @transform_1(%arg0: i32) -> (i32, i32) {
    %c0_i32 = arith.constant 0 : i32
    %c0_i32_0 = arith.constant 0 : i32
    %c0_i32_1 = arith.constant 0 : i32
    return %c0_i32, %c0_i32_0 : i32, i32
  }
  func.func @transform_2(%arg0: i32) -> (i32, i32) {
    %c0_i32 = arith.constant 0 : i32
    %c0_i32_0 = arith.constant 0 : i32
    %c0_i32_1 = arith.constant 0 : i32
    return %c0_i32, %c0_i32_0 : i32, i32
  }
  func.func @transform_3(%arg0: i32) -> (i32, i32) {
    %c0_i32 = arith.constant 0 : i32
    %c0_i32_0 = arith.constant 0 : i32
    %c0_i32_1 = arith.constant 0 : i32
    return %c0_i32, %c0_i32_0 : i32, i32
  }
  func.func @transform_4(%arg0: i32) -> (i32, i32) {
    %c0_i32 = arith.constant 0 : i32
    %c0_i32_0 = arith.constant 0 : i32
    return %arg0, %c0_i32 : i32, i32
  }
}

</mosaic_0001>

<bundles_post_ra>
// kernel: erc_xlnet_forward.1
= control target key start
LH: loop header
LB: loop body
LE: loop exit
PB: predicated region body
PF: predicated region fallthrough
CT: control target
= control target key end

     0   :  { %9 = vsyncpa [#allocation3], 0  ;;  %s687_s0 = inlined_call_operand.vmem [shape: bf16[16,128], index: 0, kind: input, shape index: {}]   ;;  %s688_s1 = inlined_call_operand.hbm [shape: bf16[128,128], index: 1, kind: input, shape index: {}]   ;;  %s689_s2 = inlined_call_operand.hbm [shape: bf16[128,384], index: 2, kind: input, shape index: {}]   ;;  %s690_s3 = inlined_call_operand.vmem [shape: f32[1,512], index: 3, kind: input, shape index: {}]   ;;  %s691_s4 = inlined_call_operand.vmem [shape: f32[16,128], index: 4, kind: output, shape index: {}]  }
   0x1   :  { %s17_s17 = sshll.u32 %s688_s1, 4  ;;  %s18_s17 = int_to_ptr.hbm [resolvable:$true] %s17_s17 }
   0x2   :  { %10 = vsyncpa [#allocation5], 0  ;;  %s629_s18 = smov [#allocation2]   ;;  %s30_s22 = sshll.u32 %s689_s2, 4  ;;  %s31_s22 = int_to_ptr.hbm [resolvable:$true] %s30_s22 }
   0x3   :  { %s19_s19 = sshll.u32 %s629_s18, 4  ;;  %s630_s23 = smov 64   ;;  %s20_s19 = int_to_ptr.vmem [resolvable:$true] %s19_s19 }
   0x4   :  { %s631_s24 = smov 4   ;;  %s632_s25 = smov [#allocation4]  }
   0x5   :  { %25 = dma.hbm_to_vmem [thread:$0]  %s18_s17, 1024, %s20_s19, [#allocation3], %s630_s23, %s630_s23, %s631_s24  }
   0x6   :  { %s32_s26 = sshll.u32 %s632_s25, 4  ;;  %s633_s27 = smov 192   ;;  %s33_s26 = int_to_ptr.vmem [resolvable:$true] %s32_s26 }
   0x7   :  { %s634_s28 = smov 12  }
   0x8   :  { %38 = dma.hbm_to_vmem [thread:$0]  %s31_s22, 3072, %s33_s26, [#allocation5], %s633_s27, %s633_s27, %s634_s28  }
   0x9   :  { %625 = dma.done.wait [#allocation3], 1024  }
   0xa   :  { %626 = vsyncadd [#allocation3], 4294966272 }
   0xb   :  { %627 = dma.done.wait [#allocation5], 3072  }
   0xc   :  { %628 = vsyncadd [#allocation5], 4294964224  ;;  %v542_v0 = vld [vmem:[#allocation2 + $0x38] sm:$0xff]  ;;  %v541_v1 = vld [vmem:[#allocation2 + $0x30] sm:$0xff] }
   0xd   :  { %125 = vmatpush.bf16.msra.mxu0 %v542_v0  ;;  %v468_v2 = vld [vmem:[#allocation4 + $0xa8] sm:$0xf]  ;;  %v550_v3 = vld [vmem:[#allocation4 + $0xb0] sm:$0xf0]  ;;  %v464_v4 = vld [vmem:[#allocation4 + $0x90] sm:$0xf] }
   0xe   :  { %v469_v5 = vor.u32 %v550_v3, %v468_v2  ;;  %v549_v6 = vld [vmem:[#allocation4 + $0x98] sm:$0xf0]  ;;  %v540_v7 = vld [vmem:[#allocation2 + $0x28] sm:$0xff]  ;;  %v460_v9 = vld [vmem:[#allocation4 + $0x78] sm:$0xf] }
   0xf   :  { %v465_v8 = vor.u32 %v549_v6, %v464_v4  ;;  %v548_v10 = vld [vmem:[#allocation4 + $0x80] sm:$0xf0]  ;;  %v456_v13 = vld [vmem:[#allocation4 + $0x60] sm:$0xf]  ;;  %v547_v14 = vld [vmem:[#allocation4 + $0x68] sm:$0xf0] }
  0x10   :  { %210 = vmatpush.bf16.msra.mxu1 %v469_v5  ;;  %v539_v11 = vld [vmem:[#allocation2 + $0x20] sm:$0xff]  ;;  %v461_v12 = vor.u32 %v548_v10, %v460_v9  ;;  %v538_v15 = vld [vmem:[#allocation2 + $0x18] sm:$0xff]  ;;  %v457_v16 = vor.u32 %v547_v14, %v456_v13  ;;  %v537_v17 = vld [vmem:[#allocation2 + $0x10] sm:$0xff] }
  0x11   :  { %126 = vmatpush.bf16.msra.mxu0 %v541_v1  ;;  %v536_v18 = vld [vmem:[#allocation2 + $0x8] sm:$0xff]  ;;  %v535_v19 = vld [vmem:[#allocation2] sm:$0xff]  ;;  %v546_v22 = vld [vmem:[#allocation4 + $0x50] sm:$0xf0] }
  0x12   :  { %v534_v20 = vld [vmem:[%s687_s0] sm:$0xff]  ;;  %v452_v21 = vld [vmem:[#allocation4 + $0x48] sm:$0xf]  ;;  %v448_v24 = vld [vmem:[#allocation4 + $0x30] sm:$0xf] }
  0x13   :  { %v453_v23 = vor.u32 %v546_v22, %v452_v21  ;;  %v545_v25 = vld [vmem:[#allocation4 + $0x38] sm:$0xf0]  ;;  %v444_v27 = vld [vmem:[#allocation4 + $0x18] sm:$0xf]  ;;  %v544_v28 = vld [vmem:[#allocation4 + $0x20] sm:$0xf0] }
  0x14   :  { %211 = vmatpush.bf16.msra.mxu1 %v465_v8  ;;  %v449_v26 = vor.u32 %v545_v25, %v448_v24  ;;  %v445_v29 = vor.u32 %v544_v28, %v444_v27  ;;  %v440_v30 = vld [vmem:[#allocation4] sm:$0xf]  ;;  %v543_v31 = vld [vmem:[#allocation4 + $0x8] sm:$0xf0]  ;;  %v558_v34 = vld [vmem:[#allocation4 + $0xb4] sm:$0xf0] }
  0x15   :  { %127 = vmatpush.bf16.msra.mxu0 %v540_v7  ;;  %v441_v32 = vor.u32 %v543_v31, %v440_v30  ;;  %v500_v33 = vld [vmem:[#allocation4 + $0xac] sm:$0xf]  ;;  %v496_v35 = vld [vmem:[#allocation4 + $0x94] sm:$0xf]  ;;  %v557_v37 = vld [vmem:[#allocation4 + $0x9c] sm:$0xf0] }
  0x16   :  { %v501_v36 = vor.u32 %v558_v34, %v500_v33  ;;  %v497_v38 = vor.u32 %v557_v37, %v496_v35  ;;  %v492_v39 = vld [vmem:[#allocation4 + $0x7c] sm:$0xf]  ;;  %v556_v40 = vld [vmem:[#allocation4 + $0x84] sm:$0xf0]  ;;  %v488_v42 = vld [vmem:[#allocation4 + $0x64] sm:$0xf] }
  0x17   :  { %v493_v41 = vor.u32 %v556_v40, %v492_v39  ;;  %v555_v43 = vld [vmem:[#allocation4 + $0x6c] sm:$0xf0]  ;;  %v573_v46 = vld [vmem:[%s690_s3] ss:$0 sm:$0xff]  ;;  %v484_v53 = vld [vmem:[#allocation4 + $0x4c] sm:$0xf] }
  0x18   :  { %212 = vmatpush.bf16.msra.mxu1 %v461_v12  ;;  %295 = vmatpush.bf16.msra.mxu2 %v501_v36  ;;  %v489_v44 = vor.u32 %v555_v43, %v488_v42  ;;  %v554_v54 = vld [vmem:[#allocation4 + $0x54] sm:$0xf0]  ;;  %v480_v56 = vld [vmem:[#allocation4 + $0x34] sm:$0xf]  ;;  %v553_v57 = vld [vmem:[#allocation4 + $0x3c] sm:$0xf0] }
  0x19   :  { %128 = vmatpush.bf16.msra.mxu0 %v539_v11  ;;  %v485_v55 = vor.u32 %v554_v54, %v484_v53  ;;  %v481_v58 = vor.u32 %v553_v57, %v480_v56  ;;  %v476_v59 = vld [vmem:[#allocation4 + $0x1c] sm:$0xf]  ;;  %v552_v60 = vld [vmem:[#allocation4 + $0x24] sm:$0xf0]  ;;  %v472_v62 = vld [vmem:[#allocation4 + $0x4] sm:$0xf] }
  0x1a   :  { %v477_v61 = vor.u32 %v552_v60, %v476_v59  ;;  %v551_v63 = vld [vmem:[#allocation4 + $0xc] sm:$0xf0]  ;;  %v566_v2 = vld [vmem:[#allocation4 + $0xb8] sm:$0xf0]  ;;  %v528_v3 = vld [vmem:[#allocation4 + $0x98] sm:$0xf] }
  0x1b   :  { %v473_v0 = vor.u32 %v551_v63, %v472_v62  ;;  %v532_v1 = vld [vmem:[#allocation4 + $0xb0] sm:$0xf]  ;;  %v565_v5 = vld [vmem:[#allocation4 + $0xa0] sm:$0xf0]  ;;  %v524_v7 = vld [vmem:[#allocation4 + $0x80] sm:$0xf] }
  0x1c   :  { %213 = vmatpush.bf16.msra.mxu1 %v457_v16  ;;  %296 = vmatpush.bf16.msra.mxu2 %v497_v38  ;;  %v533_v4 = vor.u32 %v566_v2, %v532_v1  ;;  %v529_v6 = vor.u32 %v565_v5, %v528_v3  ;;  %v564_v8 = vld [vmem:[#allocation4 + $0x88] sm:$0xf0]  ;;  %v520_v10 = vld [vmem:[#allocation4 + $0x68] sm:$0xf]  ;;  %v563_v11 = vld [vmem:[#allocation4 + $0x70] sm:$0xf0] }
  0x1d   :  { %129 = vmatpush.bf16.msra.mxu0 %v538_v15  ;;  %v525_v9 = vor.u32 %v564_v8, %v524_v7  ;;  %v521_v12 = vor.u32 %v563_v11, %v520_v10  ;;  %v574_v14 = vld [vmem:[%s690_s3 + $0x1] ss:$0 sm:$0xff]  ;;  %v516_v21 = vld [vmem:[#allocation4 + $0x50] sm:$0xf]  ;;  %v562_v22 = vld [vmem:[#allocation4 + $0x58] sm:$0xf0] }
  0x1e   :  { %380 = vmatpush.bf16.msra.mxu3 %v533_v4  ;;  %v512_v24 = vld [vmem:[#allocation4 + $0x38] sm:$0xf]  ;;  %v561_v25 = vld [vmem:[#allocation4 + $0x40] sm:$0xf0]  ;;  %v508_v27 = vld [vmem:[#allocation4 + $0x20] sm:$0xf] }
  0x1f   :  { %v560_v28 = vld [vmem:[#allocation4 + $0x28] sm:$0xf0]  ;;  %v504_v30 = vld [vmem:[#allocation4 + $0x8] sm:$0xf]  ;;  %v559_v31 = vld [vmem:[#allocation4 + $0x10] sm:$0xf0] }
  0x20   :  { %214 = vmatpush.bf16.msra.mxu1 %v453_v23  ;;  %297 = vmatpush.bf16.msra.mxu2 %v493_v41  ;;  %v517_v23 = vor.u32 %v562_v22, %v516_v21  ;;  %v575_v34 = vld [vmem:[%s690_s3 + $0x2] ss:$0 sm:$0xff]  ;;  %v576_v41 = vld [vmem:[%s690_s3 + $0x3] ss:$0 sm:$0xff] }
  0x21   :  { %130 = vmatpush.bf16.msra.mxu0 %v537_v17 }
  0x22   :  { %381 = vmatpush.bf16.msra.mxu3 %v529_v6 }
  0x24   :  { %215 = vmatpush.bf16.msra.mxu1 %v449_v26  ;;  %298 = vmatpush.bf16.msra.mxu2 %v489_v44  ;;  %v513_v26 = vor.u32 %v561_v25, %v512_v24 }
  0x25   :  { %131 = vmatpush.bf16.msra.mxu0 %v536_v18 }
  0x26   :  { %382 = vmatpush.bf16.msra.mxu3 %v525_v9 }
  0x28   :  { %216 = vmatpush.bf16.msra.mxu1 %v445_v29  ;;  %299 = vmatpush.bf16.msra.mxu2 %v485_v55  ;;  %v509_v29 = vor.u32 %v560_v28, %v508_v27 }
  0x29   :  { %132 = vmatpush.bf16.msra.mxu0 %v535_v19 }
  0x2a   :  { %383 = vmatpush.bf16.msra.mxu3 %v521_v12 }
  0x2c   :  { %133 = vmatmul.bf16.vlgmr.msra.gmra.mxu0 %v534_v20  ;;  %217 = vmatpush.bf16.msra.mxu1 %v441_v32  ;;  %v505_v32 = vor.u32 %v559_v31, %v504_v30 }
  0x2d   :  { %300 = vmatpush.bf16.msra.mxu2 %v481_v58 }
  0x2e   :  { %384 = vmatpush.bf16.msra.mxu3 %v517_v23 }
  0x31   :  { %301 = vmatpush.bf16.msra.mxu2 %v477_v61 }
  0x32   :  { %385 = vmatpush.bf16.msra.mxu3 %v513_v26 }
  0x35   :  { %302 = vmatpush.bf16.msra.mxu2 %v473_v0 }
  0x36   :  { %386 = vmatpush.bf16.msra.mxu3 %v509_v29 }
  0x3a   :  { %387 = vmatpush.bf16.msra.mxu3 %v505_v32 }
  0xa9   :  { %v134_v45 = vpop.f32.mrf.mxu0 }
  0xaa   :  { %v135_v47 = vadd.f32 %v573_v46, %v134_v45 }
  0xac   :  { %v139_v50 = vmax.f32 %v135_v47, 0.0 }
  0xb1   :  { %v136_v48 = vpop.f32.mrf.mxu0 }
  0xb2   :  { %v137_v49 = vadd.f32 %v573_v46, %v136_v48 }
  0xb4   :  { %v140_v51 = vmax.f32 %v137_v49, 0.0 }
  0xb6   :  { %v158_v52 = vpack.c.bf16 %v140_v51, %v139_v50 }
  0xb8   :  { %218 = vmatmul.bf16.vlgmr.msra.gmra.mxu1 %v158_v52 }
 0x135   :  { %v219_v13 = vpop.f32.mrf.mxu1 }
 0x136   :  { %v220_v15 = vadd.f32 %v574_v14, %v219_v13 }
 0x138   :  { %v224_v18 = vmax.f32 %v220_v15, 0.0 }
 0x13d   :  { %v221_v16 = vpop.f32.mrf.mxu1 }
 0x13e   :  { %v222_v17 = vadd.f32 %v574_v14, %v221_v16 }
 0x140   :  { %v225_v19 = vmax.f32 %v222_v17, 0.0 }
 0x142   :  { %v243_v20 = vpack.c.bf16 %v225_v19, %v224_v18 }
 0x144   :  { %303 = vmatmul.bf16.vlgmr.msra.gmra.mxu2 %v243_v20 }
 0x1c7   :  { %v304_v33 = vpop.f32.mrf.mxu2 }
 0x1c8   :  { %v305_v35 = vadd.f32 %v575_v34, %v304_v33 }
 0x1ca   :  { %v309_v38 = vmax.f32 %v305_v35, 0.0 }
 0x1cf   :  { %v306_v36 = vpop.f32.mrf.mxu2 }
 0x1d0   :  { %v307_v37 = vadd.f32 %v575_v34, %v306_v36 }
 0x1d2   :  { %v310_v39 = vmax.f32 %v307_v37, 0.0 }
 0x1d4   :  { %v328_v40 = vpack.c.bf16 %v310_v39, %v309_v38 }
 0x1d6   :  { %388 = vmatmul.bf16.vlgmr.msra.gmra.mxu3 %v328_v40 }
 0x259   :  { %v389_v42 = vpop.f32.mrf.mxu3 }
 0x25a   :  { %v390_v43 = vadd.f32 %v576_v41, %v389_v42 }
 0x25c   :  { %394 = vst [vmem:[%s691_s4] sm:$0xff] %v390_v43 }
 0x261   :  { %v391_v44 = vpop.f32.mrf.mxu3 }
 0x262   :  { %v392_v45 = vadd.f32 %v576_v41, %v391_v44 }
 0x264   :  { %395 = vst [vmem:[%s691_s4 + $0x8] sm:$0xff] %v392_v45 }
 0x265   :  { %400 = vsyncpa [#allocation3], 1 }
 0x266   :  { %401 = vsyncpa [#allocation5], 1 }

</bundles_post_ra>
